<compile_context>
chip_gen: v7x
topology: tpu7x:2x2x1
jax: 0.10.0
libtpu: 0.0.40
codegen_flags: <defaults>
</compile_context>

<pallas_src>
import jax
import jax.numpy as jnp
from jax.experimental import pallas as pl
from jax.experimental.pallas import tpu as pltpu


def _round_up(x, m):
    return ((x + m - 1) // m) * m


def _nbytes(a):
    return int(a.size) * a.dtype.itemsize


# --------------------------------------------------------------------------------------
# Kernel
# --------------------------------------------------------------------------------------
def _mae_kernel(idx_ref, x_ref, eps_ref,
                ew1_ref, ew2_ref, emvw_ref, ebias_ref,
                dw1_ref, dw2_ref, dw3_ref, dbias_ref,
                latent_ref, recon_ref):
    del idx_ref  # decoder_index is consumed by the index_maps (scalar prefetch)
    f32 = jnp.float32
    bf16 = jnp.bfloat16

    hidden = ew1_ref.shape[2]      # hidden_size
    hidden2 = ew2_ref.shape[2]     # 2 * hidden_size
    latent2 = emvw_ref.shape[2]    # 2 * latent_size  ([mean | log_var] head)
    latent = latent2 // 2
    d_h2 = dw1_ref.shape[1]        # 2 * hidden_size
    d_h = dw2_ref.shape[1]         # hidden_size
    d_out = dw3_ref.shape[1]       # input_shape

    x = x_ref[...]

    # --- encoder: Linear+ReLU, Linear+ReLU (Dropout = eval-mode identity) ------------
    h = jnp.dot(x.astype(bf16), ew1_ref[0], preferred_element_type=f32)
    h = jnp.maximum(h + ebias_ref[0, 0:1, :hidden], 0.0)
    h = jnp.dot(h.astype(bf16), ew2_ref[0], preferred_element_type=f32)
    h = jnp.maximum(h + ebias_ref[0, 1:2, :hidden2], 0.0)

    # --- enc3 folded into the concatenated latent head: one matmul -> [mean | log_var]
    mv = jnp.dot(h.astype(bf16), emvw_ref[0], preferred_element_type=f32)
    mv = mv + ebias_ref[0, 2:3, :latent2]
    mean = mv[:, :latent]
    log_var = mv[:, latent:]

    # --- reparameterization (matches the module exactly: z = mean + log_var * eps) ---
    z = mean + log_var * eps_ref[...]

    # --- shared decoder ---------------------------------------------------------------
    d = jnp.dot(z.astype(bf16), dw1_ref[...], preferred_element_type=f32)
    d = jnp.maximum(d + dbias_ref[0:1, :d_h2], 0.0)
    d = jnp.dot(d.astype(bf16), dw2_ref[...], preferred_element_type=f32)
    d = jnp.maximum(d + dbias_ref[1:2, :d_h], 0.0)
    r = jnp.dot(d.astype(bf16), dw3_ref[...], preferred_element_type=f32)
    r = r + dbias_ref[2:3, :d_out]

    # Lane-dense outputs: one [batch, 3*latent] slab (mean | log_var | z) + recon.
    latent_ref[...] = jnp.concatenate([mv, z], axis=-1)
    recon_ref[...] = r


# --------------------------------------------------------------------------------------
# Wrapper
# --------------------------------------------------------------------------------------
def multi_autoencoder_forward(x, kp, eps, decoder_index, *, block_batch=64):
    """Runs the Pallas kernel: encoder `decoder_index` + shared decoder."""
    batch, input_shape = x.shape
    latent = eps.shape[-1]
    hidden = kp["ew1"].shape[2]
    num_dec = kp["ew1"].shape[0]

    # Batch tiling: TB rows per grid step (multiple of 8), pad batch if needed.
    tb = min(block_batch, _round_up(batch, 8))
    b_pad = _round_up(batch, tb)
    if b_pad != batch:
        x = jnp.pad(x, ((0, b_pad - batch), (0, 0)))
        eps = jnp.pad(eps, ((0, b_pad - batch), (0, 0)))

    idx = jnp.asarray(decoder_index, jnp.int32).reshape((1,))
    grid = (b_pad // tb,)

    rows = lambda i, idx_ref: (i, 0)                    # batch-tiled activations
    sel3 = lambda i, idx_ref: (idx_ref[0], 0, 0)        # selected encoder slice
    shared2 = lambda i, idx_ref: (0, 0)                 # shared decoder (resident)

    in_specs = [
        pl.BlockSpec((tb, input_shape), rows),          # x
        pl.BlockSpec((tb, latent), rows),               # eps
        pl.BlockSpec((1,) + kp["ew1"].shape[1:], sel3),   # enc W1 (selected via prefetch)
        pl.BlockSpec((1,) + kp["ew2"].shape[1:], sel3),   # enc W2
        pl.BlockSpec((1,) + kp["emvw"].shape[1:], sel3),  # folded enc3 @ [mean|var] W
        pl.BlockSpec((1,) + kp["ebias"].shape[1:], sel3),  # packed encoder biases
        pl.BlockSpec(kp["dw1"].shape, shared2),
        pl.BlockSpec(kp["dw2"].shape, shared2),
        pl.BlockSpec(kp["dw3"].shape, shared2),
        pl.BlockSpec(kp["dbias"].shape, shared2),
    ]
    out_specs = (
        pl.BlockSpec((tb, 3 * latent), rows),           # [mean | log_var | z]
        pl.BlockSpec((tb, input_shape), rows),          # reconstruction
    )
    out_shape = (
        jax.ShapeDtypeStruct((b_pad, 3 * latent), jnp.float32),
        jax.ShapeDtypeStruct((b_pad, input_shape), jnp.float32),
    )

    # Advisory cost estimate so XLA can overlap this small custom call.
    flops = 2 * b_pad * (
        input_shape * hidden + hidden * 2 * hidden + 2 * hidden * 2 * latent
        + latent * 2 * hidden + 2 * hidden * hidden + hidden * input_shape)
    sel_bytes = sum(_nbytes(kp[k]) // num_dec for k in ("ew1", "ew2", "emvw", "ebias"))
    shared_bytes = sum(_nbytes(kp[k]) for k in ("dw1", "dw2", "dw3", "dbias"))
    out_bytes = b_pad * (3 * latent + input_shape) * 4
    bytes_accessed = _nbytes(x) + _nbytes(eps) + sel_bytes + shared_bytes + out_bytes

    grid_spec = pltpu.PrefetchScalarGridSpec(
        num_scalar_prefetch=1,
        grid=grid,
        in_specs=in_specs,
        out_specs=out_specs,
    )

    latent_slab, recon = pl.pallas_call(
        _mae_kernel,
        out_shape=out_shape,
        grid_spec=grid_spec,
        compiler_params=pltpu.CompilerParams(dimension_semantics=("parallel",)),
        cost_estimate=pl.CostEstimate(flops=flops, transcendentals=0,
                                      bytes_accessed=bytes_accessed),
    )(idx, x, eps,
      kp["ew1"], kp["ew2"], kp["emvw"], kp["ebias"],
      kp["dw1"], kp["dw2"], kp["dw3"], kp["dbias"])

    mean = latent_slab[:batch, :latent]
    log_var = latent_slab[:batch, latent:2 * latent]
    z = latent_slab[:batch, 2 * latent:]
    return mean, log_var, z, recon[:batch]


# --------------------------------------------------------------------------------------
# Parameters
# --------------------------------------------------------------------------------------
def init_params(key, input_shape, hidden_size, latent_size, num_decoders):
    """Deterministic PyTorch-Linear-style init. Weights stored as [in, out]; biases [1, out]."""
    def linear(k, fan_in, fan_out):
        kw, kb = jax.random.split(k)
        bound = 1.0 / jnp.sqrt(float(fan_in))
        w = jax.random.uniform(kw, (fan_in, fan_out), jnp.float32, -bound, bound)
        b = jax.random.uniform(kb, (1, fan_out), jnp.float32, -bound, bound)
        return w, b

    def stacked_linear(k, fan_in, fan_out, n):
        ws, bs = [], []
        for kk in jax.random.split(k, n):
            w, b = linear(kk, fan_in, fan_out)
            ws.append(w)
            bs.append(b)
        return jnp.stack(ws), jnp.stack(bs)

    keys = jax.random.split(key, 8)
    p = {}
    p["enc_w1"], p["enc_b1"] = stacked_linear(keys[0], input_shape, hidden_size, num_decoders)
    p["enc_w2"], p["enc_b2"] = stacked_linear(keys[1], hidden_size, 2 * hidden_size, num_decoders)
    p["enc_w3"], p["enc_b3"] = stacked_linear(keys[2], 2 * hidden_size, hidden_size, num_decoders)
    p["enc_mw"], p["enc_mb"] = stacked_linear(keys[3], hidden_size, latent_size, num_decoders)
    p["enc_vw"], p["enc_vb"] = stacked_linear(keys[4], hidden_size, latent_size, num_decoders)
    p["dec_w1"], p["dec_b1"] = linear(keys[5], latent_size, 2 * hidden_size)
    p["dec_w2"], p["dec_b2"] = linear(keys[6], 2 * hidden_size, hidden_size)
    p["dec_w3"], p["dec_b3"] = linear(keys[7], hidden_size, input_shape)
    return p


def prepare_kernel_params(p, compute_dtype=jnp.bfloat16):
    """One-time offline prep: fold enc3 into the [mean|var] head, pack biases, cast weights."""
    # Fold: encoded = h @ W3 + b3 ; [mean|var] = encoded @ [Wm|Wv] + [bm|bv]
    #  =>   [mean|var] = h @ (W3 @ [Wm|Wv]) + (b3 @ [Wm|Wv] + [bm|bv])
    mv_w = jnp.concatenate([p["enc_mw"], p["enc_vw"]], axis=-1)        # [D, h, 2L]
    mv_b = jnp.concatenate([p["enc_mb"], p["enc_vb"]], axis=-1)        # [D, 1, 2L]
    emvw = jnp.einsum("dij,djk->dik", p["enc_w3"], mv_w)               # [D, 2h, 2L]
    emvb = jnp.einsum("dij,djk->dik", p["enc_b3"], mv_w) + mv_b        # [D, 1, 2L]

    def pad_last(a, lane_w):
        return jnp.pad(a, [(0, 0)] * (a.ndim - 1) + [(0, lane_w - a.shape[-1])])

    # Encoder biases packed per decoder: [D, 3, lane_w] (row k = layer k's bias, lane offset 0).
    enc_rows = [p["enc_b1"][:, 0, :], p["enc_b2"][:, 0, :], emvb[:, 0, :]]
    enc_lane = _round_up(max(r.shape[-1] for r in enc_rows), 128)
    ebias = jnp.stack([pad_last(r, enc_lane) for r in enc_rows], axis=1)

    # Decoder biases packed: [3, lane_w].
    dec_rows = [p["dec_b1"][0], p["dec_b2"][0], p["dec_b3"][0]]
    dec_lane = _round_up(max(r.shape[-1] for r in dec_rows), 128)
    dbias = jnp.stack([pad_last(r, dec_lane) for r in dec_rows], axis=0)

    cast = lambda w: w.astype(compute_dtype)
    return {
        "ew1": cast(p["enc_w1"]),     # [D, in, h]
        "ew2": cast(p["enc_w2"]),     # [D, h, 2h]
        "emvw": cast(emvw),           # [D, 2h, 2L]
        "ebias": ebias.astype(jnp.float32),
        "dw1": cast(p["dec_w1"]),     # [L, 2h]
        "dw2": cast(p["dec_w2"]),     # [2h, h]
        "dw3": cast(p["dec_w3"]),     # [h, in]
        "dbias": dbias.astype(jnp.float32),
    }


def reference_forward(x, params, eps, decoder_index):
    """Pure-JAX f32 reference (unfolded weights) for correctness checking."""
    sel = lambda p: p[decoder_index]
    relu = lambda v: jnp.maximum(v, 0.0)
    h = relu(x @ sel(params["enc_w1"]) + sel(params["enc_b1"]))
    h = relu(h @ sel(params["enc_w2"]) + sel(params["enc_b2"]))
    enc = h @ sel(params["enc_w3"]) + sel(params["enc_b3"])
    mean = enc @ sel(params["enc_mw"]) + sel(params["enc_mb"])
    log_var = enc @ sel(params["enc_vw"]) + sel(params["enc_vb"])
    z = mean + log_var * eps
    d = relu(z @ params["dec_w1"] + params["dec_b1"])
    d = relu(d @ params["dec_w2"] + params["dec_b2"])
    recon = d @ params["dec_w3"] + params["dec_b3"]
    return mean, log_var, z, recon


if __name__ == "__main__":
    # Small shapes consistent with the module: inputs are [batch, input_shape] vectors.
    batch = 128
    input_shape = 64
    hidden_size = 32
    latent_size = 16
    num_decoders = 5
    decoder_index = 2

    key = jax.random.PRNGKey(0)
    k_params, k_x, k_eps = jax.random.split(key, 3)

    params = init_params(k_params, input_shape, hidden_size, latent_size, num_decoders)
    kparams = prepare_kernel_params(params)

    x = jax.random.normal(k_x, (batch, input_shape), jnp.float32)
    # epsilon for reparameterization (stand-in for torch.randn_like(log_var))
    eps = jax.random.normal(k_eps, (batch, latent_size), jnp.float32)

    fwd = jax.jit(multi_autoencoder_forward)   # decoder_index is a runtime value (no retrace)
    out = fwd(x, kparams, eps, decoder_index)
    jax.block_until_ready(out)
    mean, log_var, z, recon = out

    # Correctness check vs f32 reference (loosened for bf16 matmuls + folded enc3).
    ref = reference_forward(x, params, eps, decoder_index)
    for name, got, want in zip(("mean", "log_var", "z", "recon"), out, ref):
        assert got.shape == want.shape and got.dtype == want.dtype, name
        err = float(jnp.max(jnp.abs(got - want) / (jnp.abs(want) + 1.0)))
        assert err < 5e-2, f"{name} mismatch vs reference: {err}"

    print("KERNEL_OK")
</pallas_src>

<mosaic_0001>
module attributes {stable_mosaic.version = 11 : i64} {
  func.func @_mae_kernel(%arg0: i32, %arg1: memref<1xi32, #tpu.memory_space<smem>>, %arg2: memref<64x64xf32, #tpu.memory_space<vmem>>, %arg3: memref<64x16xf32, #tpu.memory_space<vmem>>, %arg4: memref<1x64x32xbf16, #tpu.memory_space<vmem>>, %arg5: memref<1x32x64xbf16, #tpu.memory_space<vmem>>, %arg6: memref<1x64x32xbf16, #tpu.memory_space<vmem>>, %arg7: memref<1x3x128xf32, #tpu.memory_space<vmem>>, %arg8: memref<16x64xbf16, #tpu.memory_space<vmem>>, %arg9: memref<64x32xbf16, #tpu.memory_space<vmem>>, %arg10: memref<32x64xbf16, #tpu.memory_space<vmem>>, %arg11: memref<3x128xf32, #tpu.memory_space<vmem>>, %arg12: memref<64x48xf32, #tpu.memory_space<vmem>>, %arg13: memref<64x64xf32, #tpu.memory_space<vmem>>) attributes {dimension_semantics = [#tpu.dimension_semantics<parallel>], iteration_bounds = array<i64: 2>, scalar_prefetch = 1 : i64, scratch_operands = 0 : i64, tpu.core_type = #tpu.core_type<tc>, window_params = [{transform_indices = @transform_0, window_bounds = array<i64: 64, 64>}, {transform_indices = @transform_1, window_bounds = array<i64: 64, 16>}, {transform_indices = @transform_2, window_bounds = array<i64: 1, 64, 32>}, {transform_indices = @transform_3, window_bounds = array<i64: 1, 32, 64>}, {transform_indices = @transform_4, window_bounds = array<i64: 1, 64, 32>}, {transform_indices = @transform_5, window_bounds = array<i64: 1, 3, 128>}, {pipeline_mode = #tpu.pipeline_mode<synchronous>, transform_indices = @transform_6, window_bounds = array<i64: 16, 64>}, {pipeline_mode = #tpu.pipeline_mode<synchronous>, transform_indices = @transform_7, window_bounds = array<i64: 64, 32>}, {pipeline_mode = #tpu.pipeline_mode<synchronous>, transform_indices = @transform_8, window_bounds = array<i64: 32, 64>}, {pipeline_mode = #tpu.pipeline_mode<synchronous>, transform_indices = @transform_9, window_bounds = array<i64: 3, 128>}, {transform_indices = @transform_10, window_bounds = array<i64: 64, 48>}, {transform_indices = @transform_11, window_bounds = array<i64: 64, 64>}]} {
    %c0 = arith.constant 0 : index
    %c0_0 = arith.constant 0 : index
    %0 = vector.load %arg2[%c0, %c0_0] : memref<64x64xf32, #tpu.memory_space<vmem>>, vector<64x64xf32>
    %1 = arith.truncf %0 : vector<64x64xf32> to vector<64x64xbf16>
    %c0_1 = arith.constant 0 : index
    %c0_2 = arith.constant 0 : index
    %c0_3 = arith.constant 0 : index
    %2 = vector.load %arg4[%c0_1, %c0_2, %c0_3] : memref<1x64x32xbf16, #tpu.memory_space<vmem>>, vector<1x64x32xbf16>
    %3 = vector.shape_cast %2 : vector<1x64x32xbf16> to vector<64x32xbf16>
    %cst = arith.constant dense<0.000000e+00> : vector<64x32xf32>
    %4 = tpu.matmul %1, %3, %cst {dimension_numbers = #tpu.dot_dimension_numbers<[1], [0], [0], [1], [0, 0, 1, 1], [], []>} : vector<64x64xbf16>, vector<64x32xbf16>, vector<64x32xf32> -> vector<64x32xf32>
    %c0_4 = arith.constant 0 : index
    %c0_5 = arith.constant 0 : index
    %c0_6 = arith.constant 0 : index
    %5 = vector.load %arg7[%c0_4, %c0_5, %c0_6] : memref<1x3x128xf32, #tpu.memory_space<vmem>>, vector<1x1x32xf32>
    %6 = vector.shape_cast %5 : vector<1x1x32xf32> to vector<1x32xf32>
    %7 = vector.broadcast %6 : vector<1x32xf32> to vector<64x32xf32>
    %8 = arith.addf %4, %7 : vector<64x32xf32>
    %cst_7 = arith.constant 0.000000e+00 : f32
    %9 = vector.broadcast %cst_7 : f32 to vector<64x32xf32>
    %10 = arith.maximumf %8, %9 : vector<64x32xf32>
    %11 = arith.truncf %10 : vector<64x32xf32> to vector<64x32xbf16>
    %c0_8 = arith.constant 0 : index
    %c0_9 = arith.constant 0 : index
    %c0_10 = arith.constant 0 : index
    %12 = vector.load %arg5[%c0_8, %c0_9, %c0_10] : memref<1x32x64xbf16, #tpu.memory_space<vmem>>, vector<1x32x64xbf16>
    %13 = vector.shape_cast %12 : vector<1x32x64xbf16> to vector<32x64xbf16>
    %cst_11 = arith.constant dense<0.000000e+00> : vector<64x64xf32>
    %14 = tpu.matmul %11, %13, %cst_11 {dimension_numbers = #tpu.dot_dimension_numbers<[1], [0], [0], [1], [0, 0, 1, 1], [], []>} : vector<64x32xbf16>, vector<32x64xbf16>, vector<64x64xf32> -> vector<64x64xf32>
    %c0_12 = arith.constant 0 : index
    %c1 = arith.constant 1 : index
    %c0_13 = arith.constant 0 : index
    %15 = vector.load %arg7[%c0_12, %c1, %c0_13] : memref<1x3x128xf32, #tpu.memory_space<vmem>>, vector<1x1x64xf32>
    %16 = vector.shape_cast %15 : vector<1x1x64xf32> to vector<1x64xf32>
    %17 = vector.broadcast %16 : vector<1x64xf32> to vector<64x64xf32>
    %18 = arith.addf %14, %17 : vector<64x64xf32>
    %cst_14 = arith.constant 0.000000e+00 : f32
    %19 = vector.broadcast %cst_14 : f32 to vector<64x64xf32>
    %20 = arith.maximumf %18, %19 : vector<64x64xf32>
    %21 = arith.truncf %20 : vector<64x64xf32> to vector<64x64xbf16>
    %c0_15 = arith.constant 0 : index
    %c0_16 = arith.constant 0 : index
    %c0_17 = arith.constant 0 : index
    %22 = vector.load %arg6[%c0_15, %c0_16, %c0_17] : memref<1x64x32xbf16, #tpu.memory_space<vmem>>, vector<1x64x32xbf16>
    %23 = vector.shape_cast %22 : vector<1x64x32xbf16> to vector<64x32xbf16>
    %cst_18 = arith.constant dense<0.000000e+00> : vector<64x32xf32>
    %24 = tpu.matmul %21, %23, %cst_18 {dimension_numbers = #tpu.dot_dimension_numbers<[1], [0], [0], [1], [0, 0, 1, 1], [], []>} : vector<64x64xbf16>, vector<64x32xbf16>, vector<64x32xf32> -> vector<64x32xf32>
    %c0_19 = arith.constant 0 : index
    %c2 = arith.constant 2 : index
    %c0_20 = arith.constant 0 : index
    %25 = vector.load %arg7[%c0_19, %c2, %c0_20] : memref<1x3x128xf32, #tpu.memory_space<vmem>>, vector<1x1x32xf32>
    %26 = vector.shape_cast %25 : vector<1x1x32xf32> to vector<1x32xf32>
    %27 = vector.broadcast %26 : vector<1x32xf32> to vector<64x32xf32>
    %28 = arith.addf %24, %27 : vector<64x32xf32>
    %29 = vector.extract_strided_slice %28 {offsets = [0, 0], sizes = [64, 16], strides = [1, 1]} : vector<64x32xf32> to vector<64x16xf32>
    %30 = vector.extract_strided_slice %28 {offsets = [0, 16], sizes = [64, 16], strides = [1, 1]} : vector<64x32xf32> to vector<64x16xf32>
    %c0_21 = arith.constant 0 : index
    %c0_22 = arith.constant 0 : index
    %31 = vector.load %arg3[%c0_21, %c0_22] : memref<64x16xf32, #tpu.memory_space<vmem>>, vector<64x16xf32>
    %32 = arith.mulf %30, %31 : vector<64x16xf32>
    %33 = arith.addf %29, %32 : vector<64x16xf32>
    %34 = arith.truncf %33 : vector<64x16xf32> to vector<64x16xbf16>
    %c0_23 = arith.constant 0 : index
    %c0_24 = arith.constant 0 : index
    %35 = vector.load %arg8[%c0_23, %c0_24] : memref<16x64xbf16, #tpu.memory_space<vmem>>, vector<16x64xbf16>
    %cst_25 = arith.constant dense<0.000000e+00> : vector<64x64xf32>
    %36 = tpu.matmul %34, %35, %cst_25 {dimension_numbers = #tpu.dot_dimension_numbers<[1], [0], [0], [1], [0, 0, 1, 1], [], []>} : vector<64x16xbf16>, vector<16x64xbf16>, vector<64x64xf32> -> vector<64x64xf32>
    %c0_26 = arith.constant 0 : index
    %c0_27 = arith.constant 0 : index
    %37 = vector.load %arg11[%c0_26, %c0_27] : memref<3x128xf32, #tpu.memory_space<vmem>>, vector<1x64xf32>
    %38 = vector.broadcast %37 : vector<1x64xf32> to vector<64x64xf32>
    %39 = arith.addf %36, %38 : vector<64x64xf32>
    %cst_28 = arith.constant 0.000000e+00 : f32
    %40 = vector.broadcast %cst_28 : f32 to vector<64x64xf32>
    %41 = arith.maximumf %39, %40 : vector<64x64xf32>
    %42 = arith.truncf %41 : vector<64x64xf32> to vector<64x64xbf16>
    %c0_29 = arith.constant 0 : index
    %c0_30 = arith.constant 0 : index
    %43 = vector.load %arg9[%c0_29, %c0_30] : memref<64x32xbf16, #tpu.memory_space<vmem>>, vector<64x32xbf16>
    %cst_31 = arith.constant dense<0.000000e+00> : vector<64x32xf32>
    %44 = tpu.matmul %42, %43, %cst_31 {dimension_numbers = #tpu.dot_dimension_numbers<[1], [0], [0], [1], [0, 0, 1, 1], [], []>} : vector<64x64xbf16>, vector<64x32xbf16>, vector<64x32xf32> -> vector<64x32xf32>
    %c1_32 = arith.constant 1 : index
    %c0_33 = arith.constant 0 : index
    %45 = vector.load %arg11[%c1_32, %c0_33] : memref<3x128xf32, #tpu.memory_space<vmem>>, vector<1x32xf32>
    %46 = vector.broadcast %45 : vector<1x32xf32> to vector<64x32xf32>
    %47 = arith.addf %44, %46 : vector<64x32xf32>
    %cst_34 = arith.constant 0.000000e+00 : f32
    %48 = vector.broadcast %cst_34 : f32 to vector<64x32xf32>
    %49 = arith.maximumf %47, %48 : vector<64x32xf32>
    %50 = arith.truncf %49 : vector<64x32xf32> to vector<64x32xbf16>
    %c0_35 = arith.constant 0 : index
    %c0_36 = arith.constant 0 : index
    %51 = vector.load %arg10[%c0_35, %c0_36] : memref<32x64xbf16, #tpu.memory_space<vmem>>, vector<32x64xbf16>
    %cst_37 = arith.constant dense<0.000000e+00> : vector<64x64xf32>
    %52 = tpu.matmul %50, %51, %cst_37 {dimension_numbers = #tpu.dot_dimension_numbers<[1], [0], [0], [1], [0, 0, 1, 1], [], []>} : vector<64x32xbf16>, vector<32x64xbf16>, vector<64x64xf32> -> vector<64x64xf32>
    %c2_38 = arith.constant 2 : index
    %c0_39 = arith.constant 0 : index
    %53 = vector.load %arg11[%c2_38, %c0_39] : memref<3x128xf32, #tpu.memory_space<vmem>>, vector<1x64xf32>
    %54 = vector.broadcast %53 : vector<1x64xf32> to vector<64x64xf32>
    %55 = arith.addf %52, %54 : vector<64x64xf32>
    %56 = tpu.concatenate %28, %33 in 1 : vector<64x32xf32>, vector<64x16xf32> -> vector<64x48xf32>
    %c0_40 = arith.constant 0 : index
    %c0_41 = arith.constant 0 : index
    %57 = vector.load %arg12[%c0_40, %c0_41] : memref<64x48xf32, #tpu.memory_space<vmem>>, vector<64x48xf32>
    tpu.vector_store %arg12[%c0_40, %c0_41], %56 {strides = array<i32>} : memref<64x48xf32, #tpu.memory_space<vmem>>, vector<64x48xf32>,
    %c0_42 = arith.constant 0 : index
    %c0_43 = arith.constant 0 : index
    %58 = vector.load %arg13[%c0_42, %c0_43] : memref<64x64xf32, #tpu.memory_space<vmem>>, vector<64x64xf32>
    tpu.vector_store %arg13[%c0_42, %c0_43], %55 {strides = array<i32>} : memref<64x64xf32, #tpu.memory_space<vmem>>, vector<64x64xf32>,
    return
  }
  func.func @transform_0(%arg0: i32, %arg1: memref<1xi32, #tpu.memory_space<smem>>) -> (i32, i32) {
    %c0_i32 = arith.constant 0 : i32
    %c0_i32_0 = arith.constant 0 : i32
    return %arg0, %c0_i32 : i32, i32
  }
  func.func @transform_1(%arg0: i32, %arg1: memref<1xi32, #tpu.memory_space<smem>>) -> (i32, i32) {
    %c0_i32 = arith.constant 0 : i32
    %c0_i32_0 = arith.constant 0 : i32
    return %arg0, %c0_i32 : i32, i32
  }
  func.func @transform_2(%arg0: i32, %arg1: memref<1xi32, #tpu.memory_space<smem>>) -> (i32, i32, i32) {
    %c0 = arith.constant 0 : index
    %0 = memref.load %arg1[%c0] : memref<1xi32, #tpu.memory_space<smem>>
    %c0_i32 = arith.constant 0 : i32
    %c0_i32_0 = arith.constant 0 : i32
    %c0_i32_1 = arith.constant 0 : i32
    return %0, %c0_i32, %c0_i32_0 : i32, i32, i32
  }
  func.func @transform_3(%arg0: i32, %arg1: memref<1xi32, #tpu.memory_space<smem>>) -> (i32, i32, i32) {
    %c0 = arith.constant 0 : index
    %0 = memref.load %arg1[%c0] : memref<1xi32, #tpu.memory_space<smem>>
    %c0_i32 = arith.constant 0 : i32
    %c0_i32_0 = arith.constant 0 : i32
    %c0_i32_1 = arith.constant 0 : i32
    return %0, %c0_i32, %c0_i32_0 : i32, i32, i32
  }
  func.func @transform_4(%arg0: i32, %arg1: memref<1xi32, #tpu.memory_space<smem>>) -> (i32, i32, i32) {
    %c0 = arith.constant 0 : index
    %0 = memref.load %arg1[%c0] : memref<1xi32, #tpu.memory_space<smem>>
    %c0_i32 = arith.constant 0 : i32
    %c0_i32_0 = arith.constant 0 : i32
    %c0_i32_1 = arith.constant 0 : i32
    return %0, %c0_i32, %c0_i32_0 : i32, i32, i32
  }
  func.func @transform_5(%arg0: i32, %arg1: memref<1xi32, #tpu.memory_space<smem>>) -> (i32, i32, i32) {
    %c0 = arith.constant 0 : index
    %0 = memref.load %arg1[%c0] : memref<1xi32, #tpu.memory_space<smem>>
    %c0_i32 = arith.constant 0 : i32
    %c0_i32_0 = arith.constant 0 : i32
    %c0_i32_1 = arith.constant 0 : i32
    return %0, %c0_i32, %c0_i32_0 : i32, i32, i32
  }
  func.func @transform_6(%arg0: i32, %arg1: memref<1xi32, #tpu.memory_space<smem>>) -> (i32, i32) {
    %c0_i32 = arith.constant 0 : i32
    %c0_i32_0 = arith.constant 0 : i32
    %c0_i32_1 = arith.constant 0 : i32
    return %c0_i32, %c0_i32_0 : i32, i32
  }
  func.func @transform_7(%arg0: i32, %arg1: memref<1xi32, #tpu.memory_space<smem>>) -> (i32, i32) {
    %c0_i32 = arith.constant 0 : i32
    %c0_i32_0 = arith.constant 0 : i32
    %c0_i32_1 = arith.constant 0 : i32
    return %c0_i32, %c0_i32_0 : i32, i32
  }
  func.func @transform_8(%arg0: i32, %arg1: memref<1xi32, #tpu.memory_space<smem>>) -> (i32, i32) {
    %c0_i32 = arith.constant 0 : i32
    %c0_i32_0 = arith.constant 0 : i32
    %c0_i32_1 = arith.constant 0 : i32
    return %c0_i32, %c0_i32_0 : i32, i32
  }
  func.func @transform_9(%arg0: i32, %arg1: memref<1xi32, #tpu.memory_space<smem>>) -> (i32, i32) {
    %c0_i32 = arith.constant 0 : i32
    %c0_i32_0 = arith.constant 0 : i32
    %c0_i32_1 = arith.constant 0 : i32
    return %c0_i32, %c0_i32_0 : i32, i32
  }
  func.func @transform_10(%arg0: i32, %arg1: memref<1xi32, #tpu.memory_space<smem>>) -> (i32, i32) {
    %c0_i32 = arith.constant 0 : i32
    %c0_i32_0 = arith.constant 0 : i32
    return %arg0, %c0_i32 : i32, i32
  }
  func.func @transform_11(%arg0: i32, %arg1: memref<1xi32, #tpu.memory_space<smem>>) -> (i32, i32) {
    %c0_i32 = arith.constant 0 : i32
    %c0_i32_0 = arith.constant 0 : i32
    return %arg0, %c0_i32 : i32, i32
  }
}

</mosaic_0001>

<bundles_post_ra>
// kernel: multi_autoencoder_forward.1
= control target key start
LH: loop header
LB: loop body
LE: loop exit
PB: predicated region body
PF: predicated region fallthrough
CT: control target
= control target key end

     0   :  { %s1838_s23 = smov 0   ;;  %s2017_s0 = inlined_call_operand.<no memory space> [shape: s32[1], index: 0, kind: input, shape index: {}]   ;;  %s2018_s1 = inlined_call_operand.vmem [shape: f32[128,64], index: 1, kind: input, shape index: {}]   ;;  %s2019_s2 = inlined_call_operand.vmem [shape: f32[128,16], index: 2, kind: input, shape index: {}]   ;;  %s2020_s3 = inlined_call_operand.vmem [shape: bf16[5,64,32], index: 3, kind: input, shape index: {}]   ;;  %s2021_s4 = inlined_call_operand.vmem [shape: bf16[5,32,64], index: 4, kind: input, shape index: {}]   ;;  %s2022_s5 = inlined_call_operand.vmem [shape: bf16[5,64,32], index: 5, kind: input, shape index: {}]   ;;  %s2023_s6 = inlined_call_operand.vmem [shape: f32[5,3,128], index: 6, kind: input, shape index: {}]   ;;  %s2024_s7 = inlined_call_operand.vmem [shape: bf16[16,64], index: 7, kind: input, shape index: {}]   ;;  %s2025_s8 = inlined_call_operand.vmem [shape: bf16[64,32], index: 8, kind: input, shape index: {}]   ;;  %s2026_s9 = inlined_call_operand.vmem [shape: bf16[32,64], index: 9, kind: input, shape index: {}]   ;;  %s2027_s10 = inlined_call_operand.vmem [shape: f32[3,128], index: 10, kind: input, shape index: {}]   ;;  %s2028_s11 = inlined_call_operand.vmem [shape: f32[128,48], index: 11, kind: output, shape index: {0}]   ;;  %s2029_s12 = inlined_call_operand.vmem [shape: f32[128,64], index: 12, kind: output, shape index: {1}]  }
   0x1   :  { %18 = sst [smem:[#allocation3]] %s2017_s0 }
   0x2 LB: > { %s1536_s24 = sadd.s32 4294967295, %s1765_s23   ;;  %p1540_p0 = scmp.ge.s32.totalorder %s1765_s23, 1  ;;  %s1765_s23 = sphi %s1838_s23, %s24_s23  }
   0x3   : > { %p409_p1 = scmp.lt.s32.totalorder %s1765_s23, 3 }
   0x5   : > { %p410_p2 = pnand %p1540_p0, %p409_p1 }
   0x6   : > { %s494_s25 = sld [smem:[#allocation3]] (!%p410_p2)  ;;  %s1541_s26 = sshll.u32 (!%p410_p2), %s1536_s24, 3  ;;  %vm583_vm0 = vcmask (!%p410_p2), 523264   ;;  %vm694_vm1 = vcmask (!%p410_p2), 261120   ;;  %vm1003_vm2 = vcmask (!%p410_p2), 130048   ;;  %vm1357_vm3 = vcmask (!%p410_p2), 392192  }
   0x7   : > { %413 = sbr.rel (%p410_p2) target bundleno = 1491 (0x5d3), region = 60  ;;  %p483_p3 = scmp.lt.s32.totalorder (!%p410_p2), %s1541_s26, 15 }
   0x8   : > { %s1767_s13 = smov (!%p410_p2), 16   ;;  %s1769_s17 = smov (!%p410_p2), 32  }
   0xc   : > { %p495_p4 = scmp.lt.s32.totalorder (!%p410_p2), %s494_s25, 4 }
   0xe   : > { %s2031_s26 = smov (!%p483_p3, %s1541_s26), 15  ;;  %s2033_s25 = smov (!%p495_p4, %s494_s25), 4 }
   0xf   : > { %s1846_s0 = sshll.u32 %s2031_s26, 3  ;;  %s1605_s30 = sshll.u32 %s2033_s25, 5 }
  0x10   : > { %s486_s29 = scalar_lea.vmem %s2018_s1, %s1846_s0  ;;  %s499_s15 = scalar_lea.vmem %s2020_s3, %s1605_s30 }
  0x11   : > { %v534_v0 = vld [vmem:[%s486_s29] sm:$0xff]  ;;  %v535_v1 = vld [vmem:[%s486_s29 + $0x8] sm:$0xff]  ;;  %v1744_v5 = vld [vmem:[%s499_s15 + $0x10] sm:$0xff]   ;;  %s1606_s16 = sshll.u32 %s2033_s25, 4  ;;  %s1873_s22 = scalar_lea.vmem %s2022_s5, %s1605_s30 }
  0x12   : > { %v542_v2 = vpack.c.bf16 %v535_v1, %v534_v0  ;;  %v1742_v3 = vld [vmem:[%s499_s15] sm:$0xff]   ;;  %v1743_v4 = vld [vmem:[%s499_s15 + $0x8] sm:$0xff]   ;;  %v1745_v6 = vld [vmem:[%s499_s15 + $0x18] sm:$0xff]   ;;  %s506_s19 = scalar_lea.vmem %s2021_s4, %s1606_s16  ;;  %s1551_s24 = sshll.u32 %s2033_s25, 2 }
  0x13   : > { %1649 = vmatprep.subr.bf16.mxu0 %v1742_v3  ;;  %v536_v7 = vld [vmem:[%s486_s29 + $0x10] sm:$0xff]  ;;  %v537_v8 = vld [vmem:[%s486_s29 + $0x18] sm:$0xff]  ;;  %v538_v9 = vld [vmem:[%s486_s29 + $0x20] sm:$0xff]  ;;  %s1880_s28 = scalar_lea.vmem %s2023_s6, %s1551_s24  ;;  %s492_s30 = scalar_lea.vmem %s2019_s2, %s1846_s0 }
  0x14   : > { %1657 = vmatprep.mubr.msk.bf16.mxu0 %vm583_vm0, %v542_v2  ;;  %1650 = vmatpush3.bf16.msra.mxu0 %v1742_v3  ;;  %v539_v10 = vld [vmem:[%s486_s29 + $0x28] sm:$0xff]  ;;  %v543_v11 = vpack.c.bf16 %v537_v8, %v536_v7  ;;  %v540_v13 = vld [vmem:[%s486_s29 + $0x30] sm:$0xff]  ;;  %v541_v14 = vld [vmem:[%s486_s29 + $0x38] sm:$0xff]  ;;  %s1768_s16 = smov 112   ;;  %s531_s26 = scalar_lea.vmem %s2029_s12, %s1846_s0 }
  0x15   : > { %1651 = vmatprep.subr.bf16.mxu0 %v1743_v4  ;;  %v544_v12 = vpack.c.bf16 %v539_v10, %v538_v9  ;;  %v545_v15 = vpack.c.bf16 %v541_v14, %v540_v13  ;;  %v1746_v16 = vld [vmem:[%s506_s19] sm:$0xff]   ;;  %v1747_v17 = vld [vmem:[%s506_s19 + $0x8] sm:$0xff]   ;;  %v1750_v49 = vld [vmem:[%s1873_s22 + $0x10] sm:$0xff]  }
  0x16   : > { %1665 = vmatprep.subr.bf16.mxu1 %v1746_v16  ;;  %v1748_v18 = vld [vmem:[%s1873_s22] sm:$0xff]   ;;  %v1749_v37 = vld [vmem:[%s1873_s22 + $0x8] sm:$0xff]   ;;  %v1751_v50 = vld [vmem:[%s1873_s22 + $0x18] sm:$0xff]  }
  0x17   : > { %1666 = vmatpush3.bf16.msra.mxu1 %v1746_v16  ;;  %v1556_v19 = vld [vmem:[%s1880_s28] ss:$0 sm:$0xff]  ;;  %v900_v52 = vld [vmem:[%s492_s30 + $0x10] sm:$0xff]  ;;  %v899_v53 = vld [vmem:[%s492_s30 + $0x8] sm:$0xff] }
  0x18   : > { %1652 = vmatpush3.bf16.msra.mxu0 %v1743_v4  ;;  %1667 = vmatprep.subr.bf16.mxu1 %v1747_v17  ;;  %v898_v51 = vld [vmem:[%s492_s30] sm:$0xff]  ;;  %v901_v54 = vld [vmem:[%s492_s30 + $0x18] sm:$0xff]  ;;  %v903_v56 = vld [vmem:[%s492_s30 + $0x28] sm:$0xff] }
  0x19   : > { %1653 = vmatprep.subr.bf16.mxu0 %v1744_v5  ;;  %914 = vrot.lane.b32.xlu0 %v898_v51, %s1767_s13  ;;  %v902_v55 = vld [vmem:[%s492_s30 + $0x20] sm:$0xff]  ;;  %v904_v57 = vld [vmem:[%s492_s30 + $0x30] sm:$0xff]  ;;  %v905_v58 = vld [vmem:[%s492_s30 + $0x38] sm:$0xff] }
  0x1a   : > { %918 = vrot.lane.b32.xlu1 %v900_v52, %s1767_s13  ;;  %v1565_v59 = vld [vmem:[%s1880_s28 + $0x1] ss:$0 sm:$0xff] }
  0x1b   : > { %1668 = vmatpush3.bf16.msra.mxu1 %v1747_v17 }
  0x1c   : > { %1654 = vmatpush3.bf16.msra.mxu0 %v1744_v5  ;;  %1677 = vmatprep.subr.bf16.mxu1 %v1748_v18 }
  0x1d   : > { %1655 = vmatprep.subr.bf16.mxu0 %v1745_v6  ;;  %916 = vrot.lane.b32.xlu0 %v899_v53, %s1767_s13 }
  0x1e   : > { %920 = vrot.lane.b32.xlu1 %v901_v54, %s1767_s13 }
  0x20   : > { %1656 = vmatpush3.bf16.msra.mxu0 %v1745_v6 }
  0x21   : > { %922 = vrot.lane.b32.xlu0 %v902_v55, %s1767_s13 }
  0x22   : > { %924 = vrot.lane.b32.xlu1 %v903_v56, %s1767_s13 }
  0x23   : > { %1658 = vmatmul.mubr.msk.bf16.vlgmr.msra.gmra.mrb[0].mxu0 %vm583_vm0, %v543_v11 }
  0x24   : > { %1661 = vmatprep.mubr.msk.bf16.mxu0 %vm583_vm0, %v544_v12 }
  0x25   : > { %926 = vrot.lane.b32.xlu0 %v904_v57, %s1767_s13 }
  0x26   : > { %928 = vrot.lane.b32.xlu1 %v905_v58, %s1767_s13  ;;  %s525_s13 = scalar_lea.vmem %s2028_s11, %s1846_s0 }
  0x2b   : > { %1662 = vmatmul.mubr.msk.bf16.gmra.mrb[4].mxu0 %vm583_vm0, %v545_v15 }
  0xf6   : > { %v1659_v20 = vpop.f32.mrb[0].mxu0 }
  0xf7   : > { %v639_v21 = vadd.f32 %v1659_v20, %v1556_v19  ;;  %v630_v22 = vpop.f32.mrb[1].mxu0 }
  0xf8   : > { %v631_v23 = vadd.f32 %v1556_v19, %v630_v22  ;;  %v1660_v24 = vpop.f32.mrb[2].mxu0 }
  0xf9   : > { %v642_v25 = vadd.f32 %v1660_v24, %v1556_v19  ;;  %v633_v26 = vpop.f32.mrb[3].mxu0  ;;  %v663_v28 = vmax.f32 %v639_v21, 0.0  ;;  %v1752_v24 = vld [vmem:[%s2024_s7] sm:$0xff]  }
  0xfa   : > { %v634_v27 = vadd.f32 %v1556_v19, %v633_v26  ;;  %v661_v30 = vmax.f32 %v631_v23, 0.0  ;;  %1693 = vmatprep.subr.bf16.mxu0 %v1752_v24  ;;  %v919_v26 = vpop.permute.xlu1 %918 }
  0xfb   : > { %v664_v29 = vmax.f32 %v642_v25, 0.0  ;;  %1694 = vmatpush3.bf16.msra.mxu0 %v1752_v24  ;;  %v915_v25 = vpop.permute.xlu0 %914 }
  0xfc   : > { %v662_v31 = vmax.f32 %v634_v27, 0.0  ;;  %v1572_v27 = vld [vmem:[%s1880_s28 + $0x2] ss:$0 sm:$0xff] }
  0xfd   : > { %v670_v32 = vpack.c.bf16 %v664_v29, %v663_v28 }
  0xfe   : > { %v1663_v33 = vpop.f32.mrb[4].mxu0  ;;  %v669_v34 = vpack.c.bf16 %v662_v31, %v661_v30 }
  0xff   : > { %v655_v35 = vadd.f32 %v1663_v33, %v1556_v19  ;;  %v646_v36 = vpop.f32.mrb[5].mxu0  ;;  %v917_v30 = vpop.permute.xlu0 %916 }
 0x100   : > { %v647_v38 = vadd.f32 %v1556_v19, %v646_v36  ;;  %v1664_v39 = vpop.f32.mrb[6].mxu0  ;;  %1669 = vmatprep.mubr.msk.bf16.mxu1 %vm694_vm1, %v669_v34  ;;  %v921_v34 = vpop.permute.xlu1 %920 }
 0x101   : > { %v658_v40 = vadd.f32 %v1664_v39, %v1556_v19  ;;  %v649_v41 = vpop.f32.mrb[7].mxu0  ;;  %1670 = vmatmul.mubr.msk.bf16.vlgmr.msra.gmra.mrb[0].mxu1 %vm694_vm1, %v670_v32  ;;  %v667_v43 = vmax.f32 %v655_v35, 0.0 }
 0x102   : > { %v650_v42 = vadd.f32 %v1556_v19, %v649_v41  ;;  %1678 = vmatpush3.bf16.msra.mxu1 %v1748_v18  ;;  %v665_v45 = vmax.f32 %v647_v38, 0.0 }
 0x103   : > { %v668_v44 = vmax.f32 %v658_v40, 0.0  ;;  %1679 = vmatprep.subr.bf16.mxu1 %v1749_v37  ;;  %v923_v40 = vpop.permute.xlu0 %922 }
 0x104   : > { %v666_v46 = vmax.f32 %v650_v42, 0.0 }
 0x105   : > { %v672_v47 = vpack.c.bf16 %v668_v44, %v667_v43  ;;  %v925_v43 = vpop.permute.xlu1 %924 }
 0x106   : > { %v671_v48 = vpack.c.bf16 %v666_v46, %v665_v45  ;;  %1680 = vmatpush3.bf16.msra.mxu1 %v1749_v37 }
 0x107   : > { %1681 = vmatprep.subr.bf16.mxu1 %v1750_v49  ;;  %v927_v52 = vpop.permute.xlu0 %926 }
 0x108   : > { %1673 = vmatprep.mubr.msk.bf16.mxu1 %vm694_vm1, %v671_v48 }
 0x109   : > { %1674 = vmatmul.mubr.msk.bf16.gmra.mrb[4].mxu1 %vm694_vm1, %v672_v47  ;;  %v929_v55 = vpop.permute.xlu1 %928 }
 0x10a   : > { %1682 = vmatpush3.bf16.msra.mxu1 %v1750_v49 }
 0x10b   : > { %1683 = vmatprep.subr.bf16.mxu1 %v1751_v50 }
 0x10e   : > { %1684 = vmatpush3.bf16.msra.mxu1 %v1751_v50 }
 0x1d4   : > { %v1671_v60 = vpop.f32.mrb[0].mxu1 }
 0x1d5   : > { %v750_v61 = vadd.f32 %v1671_v60, %v1565_v59  ;;  %v741_v62 = vpop.f32.mrb[1].mxu1 }
 0x1d6   : > { %v742_v63 = vadd.f32 %v1565_v59, %v741_v62  ;;  %v1672_v0 = vpop.f32.mrb[2].mxu1 }
 0x1d7   : > { %v753_v1 = vadd.f32 %v1672_v0, %v1565_v59  ;;  %v744_v2 = vpop.f32.mrb[3].mxu1  ;;  %v774_v4 = vmax.f32 %v750_v61, 0.0 }
 0x1d8   : > { %v745_v3 = vadd.f32 %v1565_v59, %v744_v2  ;;  %v772_v6 = vmax.f32 %v742_v63, 0.0 }
 0x1d9   : > { %v775_v5 = vmax.f32 %v753_v1, 0.0 }
 0x1da   : > { %v773_v7 = vmax.f32 %v745_v3, 0.0 }
 0x1db   : > { %v781_v8 = vpack.c.bf16 %v775_v5, %v774_v4  ;;  %v1753_v5 = vld [vmem:[%s2025_s8] sm:$0xff]  }
 0x1dc   : > { %v780_v9 = vpack.c.bf16 %v773_v7, %v772_v6  ;;  %v1675_v10 = vpop.f32.mrb[4].mxu1  ;;  %v1754_v7 = vld [vmem:[%s2025_s8 + $0x8] sm:$0xff]   ;;  %1703 = vmatprep.subr.bf16.mxu1 %v1753_v5 }
 0x1dd   : > { %v766_v11 = vadd.f32 %v1675_v10, %v1565_v59  ;;  %v757_v12 = vpop.f32.mrb[5].mxu1 }
 0x1de   : > { %v758_v13 = vadd.f32 %v1565_v59, %v757_v12  ;;  %v1676_v14 = vpop.f32.mrb[6].mxu1  ;;  %1685 = vmatprep.mubr.msk.bf16.mxu1 %vm583_vm0, %v780_v9 }
 0x1df   : > { %v769_v15 = vadd.f32 %v1676_v14, %v1565_v59  ;;  %v760_v16 = vpop.f32.mrb[7].mxu1  ;;  %1686 = vmatmul.mubr.msk.bf16.vlgmr.msra.gmra.mrb[8].mxu1 %vm583_vm0, %v781_v8  ;;  %v778_v18 = vmax.f32 %v766_v11, 0.0 }
 0x1e0   : > { %v761_v17 = vadd.f32 %v1565_v59, %v760_v16  ;;  %v776_v20 = vmax.f32 %v758_v13, 0.0  ;;  %1704 = vmatpush3.bf16.msra.mxu1 %v1753_v5  ;;  %v1755_v16 = vld [vmem:[%s2025_s8 + $0x10] sm:$0xff]  }
 0x1e1   : > { %v779_v19 = vmax.f32 %v769_v15, 0.0  ;;  %1705 = vmatprep.subr.bf16.mxu1 %v1754_v7 }
 0x1e2   : > { %v777_v21 = vmax.f32 %v761_v17, 0.0  ;;  %v1756_v17 = vld [vmem:[%s2025_s8 + $0x18] sm:$0xff]  }
 0x1e3   : > { %v783_v22 = vpack.c.bf16 %v779_v19, %v778_v18  ;;  %v1757_v18 = vld [vmem:[%s2026_s9] sm:$0xff]  }
 0x1e4   : > { %v782_v23 = vpack.c.bf16 %v777_v21, %v776_v20  ;;  %1706 = vmatpush3.bf16.msra.mxu1 %v1754_v7  ;;  %1719 = vmatprep.subr.bf16.mxu0 %v1757_v18 }
 0x1e5   : > { %1707 = vmatprep.subr.bf16.mxu1 %v1755_v16 }
 0x1e6   : > { %1689 = vmatprep.mubr.msk.bf16.mxu1 %vm583_vm0, %v782_v23 }
 0x1e7   : > { %1690 = vmatmul.mubr.msk.bf16.gmra.mrb[12].mxu1 %vm583_vm0, %v783_v22 }
 0x1e8   : > { %1708 = vmatpush3.bf16.msra.mxu1 %v1755_v16 }
 0x1e9   : > { %1709 = vmatprep.subr.bf16.mxu1 %v1756_v17 }
 0x1ec   : > { %1710 = vmatpush3.bf16.msra.mxu1 %v1756_v17 }
 0x2b2   : > { %v1687_v28 = vpop.f32.mrb[8].mxu1 }
 0x2b3   : > { %v867_v29 = vpop.f32.mrb[9].mxu1  ;;  %v1905_v35 = vadd.f32 %v1687_v28, %v1572_v27 }
 0x2b4   : > { %v1903_v31 = vadd.f32 %v1572_v27, %v867_v29  ;;  %v1688_v32 = vpop.f32.mrb[10].mxu1 }
 0x2b5   : > { %v870_v33 = vpop.f32.mrb[11].mxu1  ;;  %v1910_v38 = vadd.f32 %v1688_v32, %v1572_v27  ;;  %v940_v42 = vmul.f32 %v919_v26, %v1905_v35 }
 0x2b6   : > { %v1907_v36 = vadd.f32 %v1572_v27, %v870_v33  ;;  %v938_v37 = vmul.f32 %v915_v25, %v1903_v31 }
 0x2b7   : > { %v941_v45 = vmul.f32 %v921_v34, %v1910_v38 }
 0x2b8   : > { %954 = vrot.lane.b32.xlu0 %v938_v37, %s1768_s16  ;;  %v939_v39 = vmul.f32 %v917_v30, %v1907_v36 }
 0x2ba   : > { %v1691_v41 = vpop.f32.mrb[12].mxu1  ;;  %956 = vrot.lane.b32.xlu1 %v939_v39, %s1768_s16 }
 0x2bb   : > { %v883_v44 = vpop.f32.mrb[13].mxu1  ;;  %v1917_v49 = vadd.f32 %v1691_v41, %v1572_v27 }
 0x2bc   : > { %v1915_v46 = vadd.f32 %v1572_v27, %v883_v44  ;;  %v1692_v47 = vpop.f32.mrb[14].mxu1  ;;  %958 = vrot.lane.b32.xlu0 %v940_v42, %s1768_s16 }
 0x2bd   : > { %v886_v48 = vpop.f32.mrb[15].mxu1  ;;  %v1922_v53 = vadd.f32 %v1692_v47, %v1572_v27  ;;  %v944_v56 = vmul.f32 %v927_v52, %v1917_v49 }
 0x2be   : > { %v1919_v50 = vadd.f32 %v1572_v27, %v886_v48  ;;  %960 = vrot.lane.b32.xlu1 %v941_v45, %s1768_s16  ;;  %v942_v51 = vmul.f32 %v923_v40, %v1915_v46 }
 0x2bf   : > { %v945_v57 = vmul.f32 %v929_v55, %v1922_v53 }
 0x2c0   : > { %962 = vrot.lane.b32.xlu0 %v942_v51, %s1768_s16  ;;  %v943_v54 = vmul.f32 %v925_v43, %v1919_v50 }
 0x2c2   : > { %964 = vrot.lane.b32.xlu1 %v943_v54, %s1768_s16 }
 0x2c4   : > { %966 = vrot.lane.b32.xlu0 %v944_v56, %s1768_s16 }
 0x2c6   : > { %968 = vrot.lane.b32.xlu1 %v945_v57, %s1768_s16 }
 0x32a   : > { %v955_v58 = vpop.permute.xlu0 %954 }
 0x32b   : > { %v978_v60 = vadd.f32 %v955_v58, %v1903_v31 }
 0x32c   : > { %v957_v59 = vpop.permute.xlu1 %956 }
 0x32d   : > { %v979_v61 = vadd.f32 %v957_v59, %v1907_v36 }
 0x32e   : > { %v959_v62 = vpop.permute.xlu0 %958 }
 0x32f   : > { %v986_v63 = vpack.c.bf16 %v979_v61, %v978_v60  ;;  %v980_v0 = vadd.f32 %v959_v62, %v1905_v35 }
 0x330   : > { %v961_v1 = vpop.permute.xlu1 %960 }
 0x331   : > { %v981_v2 = vadd.f32 %v961_v1, %v1910_v38  ;;  %1695 = vmatprep.mubr.msk.bf16.mxu0 %vm1003_vm2, %v986_v63  ;;  %1329 = vrot.lane.b32.xlu0 %v980_v0, %s1769_s17  ;;  %v1587_v1 = vld [vmem:[%s2027_s10 + $0x1] ss:$0 sm:$0xff] }
 0x332   : > { %v963_v3 = vpop.permute.xlu0 %962 }
 0x333   : > { %v987_v4 = vpack.c.bf16 %v981_v2, %v980_v0  ;;  %1331 = vrot.lane.b32.xlu1 %v981_v2, %s1769_s17  ;;  %v982_v8 = vadd.f32 %v963_v3, %v1915_v46  ;;  %v1758_v0 = vld [vmem:[%s2026_s9 + $0x8] sm:$0xff]  }
 0x334   : > { %v965_v6 = vpop.permute.xlu1 %964 }
 0x335   : > { %v983_v9 = vadd.f32 %v965_v6, %v1919_v50  ;;  %1325 = vrot.lane.b32.xlu0 %v978_v60, %s1769_s17  ;;  %1696 = vmatmul.mubr.msk.bf16.vlgmr.msra.gmra.mrb[8].mxu0 %vm1003_vm2, %v987_v4 }
 0x336   : > { %v967_v10 = vpop.permute.xlu0 %966  ;;  %1720 = vmatpush3.bf16.msra.mxu0 %v1757_v18 }
 0x337   : > { %v988_v11 = vpack.c.bf16 %v983_v9, %v982_v8  ;;  %1327 = vrot.lane.b32.xlu1 %v979_v61, %s1769_s17  ;;  %v984_v13 = vadd.f32 %v967_v10, %v1917_v49  ;;  %1721 = vmatprep.subr.bf16.mxu0 %v1758_v0 }
 0x338   : > { %v969_v12 = vpop.permute.xlu1 %968 }
 0x339   : > { %v985_v14 = vadd.f32 %v969_v12, %v1922_v53  ;;  %1333 = vrot.lane.b32.xlu0 %v982_v8, %s1769_s17  ;;  %1699 = vmatprep.mubr.msk.bf16.mxu0 %vm1003_vm2, %v988_v11 }
 0x33a   : > { %1722 = vmatpush3.bf16.msra.mxu0 %v1758_v0 }
 0x33b   : > { %v989_v15 = vpack.c.bf16 %v985_v14, %v984_v13  ;;  %1335 = vrot.lane.b32.xlu1 %v983_v9, %s1769_s17 }
 0x33d   : > { %1337 = vrot.lane.b32.xlu0 %v984_v13, %s1769_s17  ;;  %1700 = vmatmul.mubr.msk.bf16.gmra.mrb[12].mxu0 %vm1003_vm2, %v989_v15 }
 0x33f   : > { %1339 = vrot.lane.b32.xlu1 %v985_v14, %s1769_s17 }
 0x3a3   : > { %v1330_v19 = vpop.permute.xlu0 %1329 }
 0x3a4   : > { %v1351_v20 = vsel %vm694_vm1, %v1905_v35, %v1330_v19  ;;  %v1581_v35 = vld [vmem:[%s2027_s10] ss:$0 sm:$0xff] }
 0x3a5   : > { %1360 = vst.msk [vmem:[%s525_s13 + $0x10] sm:$0xff] %vm1357_vm3, %v1351_v20  ;;  %v1332_v21 = vpop.permute.xlu1 %1331 }
 0x3a6   : > { %v1352_v22 = vsel %vm694_vm1, %v1910_v38, %v1332_v21 }
 0x3a7   : > { %1361 = vst.msk [vmem:[%s525_s13 + $0x18] sm:$0xff] %vm1357_vm3, %v1352_v22  ;;  %v1326_v23 = vpop.permute.xlu0 %1325 }
 0x3a8   : > { %v1349_v24 = vsel %vm694_vm1, %v1903_v31, %v1326_v23 }
 0x3a9   : > { %1358 = vst.msk [vmem:[%s525_s13] sm:$0xff] %vm1357_vm3, %v1349_v24  ;;  %v1328_v25 = vpop.permute.xlu1 %1327 }
 0x3aa   : > { %v1350_v26 = vsel %vm694_vm1, %v1907_v36, %v1328_v25 }
 0x3ab   : > { %1359 = vst.msk [vmem:[%s525_s13 + $0x8] sm:$0xff] %vm1357_vm3, %v1350_v26  ;;  %v1334_v27 = vpop.permute.xlu0 %1333 }
 0x3ac   : > { %v1353_v28 = vsel %vm694_vm1, %v1915_v46, %v1334_v27 }
 0x3ad   : > { %1362 = vst.msk [vmem:[%s525_s13 + $0x20] sm:$0xff] %vm1357_vm3, %v1353_v28  ;;  %v1336_v29 = vpop.permute.xlu1 %1335 }
 0x3ae   : > { %v1354_v30 = vsel %vm694_vm1, %v1919_v50, %v1336_v29 }
 0x3af   : > { %1363 = vst.msk [vmem:[%s525_s13 + $0x28] sm:$0xff] %vm1357_vm3, %v1354_v30  ;;  %v1338_v31 = vpop.permute.xlu0 %1337  ;;  %v1596_v30 = vld [vmem:[%s2027_s10 + $0x2] ss:$0 sm:$0xff] }
 0x3b0   : > { %v1355_v32 = vsel %vm694_vm1, %v1917_v49, %v1338_v31 }
 0x3b1   : > { %1364 = vst.msk [vmem:[%s525_s13 + $0x30] sm:$0xff] %vm1357_vm3, %v1355_v32  ;;  %v1340_v33 = vpop.permute.xlu1 %1339 }
 0x3b2   : > { %v1356_v34 = vsel %vm694_vm1, %v1922_v53, %v1340_v33 }
 0x3b3   : > { %1365 = vst.msk [vmem:[%s525_s13 + $0x38] sm:$0xff] %vm1357_vm3, %v1356_v34 }
 0x408   : > { %v1697_v36 = vpop.f32.mrb[8].mxu0 }
 0x409   : > { %v1059_v37 = vadd.f32 %v1697_v36, %v1581_v35  ;;  %v1050_v38 = vpop.f32.mrb[9].mxu0 }
 0x40a   : > { %v1051_v39 = vadd.f32 %v1581_v35, %v1050_v38  ;;  %v1698_v40 = vpop.f32.mrb[10].mxu0 }
 0x40b   : > { %v1062_v41 = vadd.f32 %v1698_v40, %v1581_v35  ;;  %v1053_v42 = vpop.f32.mrb[11].mxu0  ;;  %v1083_v44 = vmax.f32 %v1059_v37, 0.0 }
 0x40c   : > { %v1054_v43 = vadd.f32 %v1581_v35, %v1053_v42  ;;  %v1081_v46 = vmax.f32 %v1051_v39, 0.0 }
 0x40d   : > { %v1084_v45 = vmax.f32 %v1062_v41, 0.0 }
 0x40e   : > { %v1082_v47 = vmax.f32 %v1054_v43, 0.0 }
 0x40f   : > { %v1090_v48 = vpack.c.bf16 %v1084_v45, %v1083_v44 }
 0x410   : > { %v1089_v49 = vpack.c.bf16 %v1082_v47, %v1081_v46  ;;  %v1701_v50 = vpop.f32.mrb[12].mxu0 }
 0x411   : > { %v1075_v51 = vadd.f32 %v1701_v50, %v1581_v35  ;;  %v1066_v52 = vpop.f32.mrb[13].mxu0 }
 0x412   : > { %v1067_v53 = vadd.f32 %v1581_v35, %v1066_v52  ;;  %v1702_v54 = vpop.f32.mrb[14].mxu0  ;;  %1711 = vmatprep.mubr.msk.bf16.mxu1 %vm583_vm0, %v1089_v49 }
 0x413   : > { %v1078_v55 = vadd.f32 %v1702_v54, %v1581_v35  ;;  %v1069_v56 = vpop.f32.mrb[15].mxu0  ;;  %1712 = vmatmul.mubr.msk.bf16.vlgmr.msra.gmra.mrb[16].mxu1 %vm583_vm0, %v1090_v48  ;;  %v1087_v58 = vmax.f32 %v1075_v51, 0.0 }
 0x414   : > { %v1070_v57 = vadd.f32 %v1581_v35, %v1069_v56  ;;  %v1085_v60 = vmax.f32 %v1067_v53, 0.0 }
 0x415   : > { %v1088_v59 = vmax.f32 %v1078_v55, 0.0 }
 0x416   : > { %v1086_v61 = vmax.f32 %v1070_v57, 0.0 }
 0x417   : > { %v1092_v62 = vpack.c.bf16 %v1088_v59, %v1087_v58 }
 0x418   : > { %v1091_v63 = vpack.c.bf16 %v1086_v61, %v1085_v60 }
 0x41a   : > { %1715 = vmatprep.mubr.msk.bf16.mxu1 %vm583_vm0, %v1091_v63 }
 0x41b   : > { %1716 = vmatmul.mubr.msk.bf16.gmra.mrb[20].mxu1 %vm583_vm0, %v1092_v62 }
 0x4e6   : > { %v1713_v2 = vpop.f32.mrb[16].mxu1 }
 0x4e7   : > { %v1185_v3 = vadd.f32 %v1713_v2, %v1587_v1  ;;  %v1176_v4 = vpop.f32.mrb[17].mxu1 }
 0x4e8   : > { %v1177_v5 = vadd.f32 %v1587_v1, %v1176_v4  ;;  %v1714_v6 = vpop.f32.mrb[18].mxu1 }
 0x4e9   : > { %v1188_v7 = vadd.f32 %v1714_v6, %v1587_v1  ;;  %v1179_v8 = vpop.f32.mrb[19].mxu1  ;;  %v1209_v10 = vmax.f32 %v1185_v3, 0.0 }
 0x4ea   : > { %v1180_v9 = vadd.f32 %v1587_v1, %v1179_v8  ;;  %v1207_v12 = vmax.f32 %v1177_v5, 0.0 }
 0x4eb   : > { %v1210_v11 = vmax.f32 %v1188_v7, 0.0 }
 0x4ec   : > { %v1208_v13 = vmax.f32 %v1180_v9, 0.0 }
 0x4ed   : > { %v1216_v14 = vpack.c.bf16 %v1210_v11, %v1209_v10 }
 0x4ee   : > { %v1215_v15 = vpack.c.bf16 %v1208_v13, %v1207_v12  ;;  %v1717_v16 = vpop.f32.mrb[20].mxu1 }
 0x4ef   : > { %v1201_v17 = vadd.f32 %v1717_v16, %v1587_v1  ;;  %v1192_v18 = vpop.f32.mrb[21].mxu1 }
 0x4f0   : > { %v1193_v19 = vadd.f32 %v1587_v1, %v1192_v18  ;;  %v1718_v20 = vpop.f32.mrb[22].mxu1  ;;  %1723 = vmatprep.mubr.msk.bf16.mxu0 %vm694_vm1, %v1215_v15 }
 0x4f1   : > { %v1204_v21 = vadd.f32 %v1718_v20, %v1587_v1  ;;  %v1195_v22 = vpop.f32.mrb[23].mxu1  ;;  %1724 = vmatmul.mubr.msk.bf16.vlgmr.msra.gmra.mrb[16].mxu0 %vm694_vm1, %v1216_v14  ;;  %v1213_v24 = vmax.f32 %v1201_v17, 0.0 }
 0x4f2   : > { %v1196_v23 = vadd.f32 %v1587_v1, %v1195_v22  ;;  %v1211_v26 = vmax.f32 %v1193_v19, 0.0 }
 0x4f3   : > { %v1214_v25 = vmax.f32 %v1204_v21, 0.0 }
 0x4f4   : > { %v1212_v27 = vmax.f32 %v1196_v23, 0.0 }
 0x4f5   : > { %v1218_v28 = vpack.c.bf16 %v1214_v25, %v1213_v24 }
 0x4f6   : > { %v1217_v29 = vpack.c.bf16 %v1212_v27, %v1211_v26 }
 0x4f8   : > { %1727 = vmatprep.mubr.msk.bf16.mxu0 %vm694_vm1, %v1217_v29 }
 0x4f9   : > { %1728 = vmatmul.mubr.msk.bf16.gmra.mrb[20].mxu0 %vm694_vm1, %v1218_v28 }
 0x5c4   : > { %v1725_v31 = vpop.f32.mrb[16].mxu0 }
 0x5c5   : > { %v1295_v32 = vadd.f32 %v1725_v31, %v1596_v30  ;;  %v1286_v33 = vpop.f32.mrb[17].mxu0 }
 0x5c6   : > { %v1287_v34 = vadd.f32 %v1596_v30, %v1286_v33  ;;  %v1726_v35 = vpop.f32.mrb[18].mxu0 }
 0x5c7   : > { %1368 = vst.msk [vmem:[%s531_s26 + $0x10] sm:$0xff] %vm583_vm0, %v1295_v32  ;;  %v1298_v36 = vadd.f32 %v1726_v35, %v1596_v30  ;;  %v1289_v37 = vpop.f32.mrb[19].mxu0 }
 0x5c8   : > { %1366 = vst.msk [vmem:[%s531_s26] sm:$0xff] %vm583_vm0, %v1287_v34  ;;  %v1290_v38 = vadd.f32 %v1596_v30, %v1289_v37 }
 0x5c9   : > { %1369 = vst.msk [vmem:[%s531_s26 + $0x18] sm:$0xff] %vm583_vm0, %v1298_v36 }
 0x5ca   : > { %1367 = vst.msk [vmem:[%s531_s26 + $0x8] sm:$0xff] %vm583_vm0, %v1290_v38 }
 0x5cc   : > { %v1729_v39 = vpop.f32.mrb[20].mxu0 }
 0x5cd   : > { %v1311_v40 = vadd.f32 %v1729_v39, %v1596_v30  ;;  %v1302_v41 = vpop.f32.mrb[21].mxu0 }
 0x5ce   : > { %v1303_v42 = vadd.f32 %v1596_v30, %v1302_v41  ;;  %v1730_v43 = vpop.f32.mrb[22].mxu0 }
 0x5cf   : > { %1372 = vst.msk [vmem:[%s531_s26 + $0x30] sm:$0xff] %vm583_vm0, %v1311_v40  ;;  %v1314_v44 = vadd.f32 %v1730_v43, %v1596_v30  ;;  %v1305_v45 = vpop.f32.mrb[23].mxu0 }
 0x5d0   : > { %1370 = vst.msk [vmem:[%s531_s26 + $0x20] sm:$0xff] %vm583_vm0, %v1303_v42  ;;  %v1306_v46 = vadd.f32 %v1596_v30, %v1305_v45 }
 0x5d1   : > { %1373 = vst.msk [vmem:[%s531_s26 + $0x38] sm:$0xff] %vm583_vm0, %v1314_v44 }
 0x5d2   : > { %1371 = vst.msk [vmem:[%s531_s26 + $0x28] sm:$0xff] %vm583_vm0, %v1306_v46 }
 0x5d3 PF: > { %s24_s23 = sadd.s32 1, %s1765_s23  }
 0x5d4   : > { %p21_p5 = scmp.ge.s32.totalorder %s24_s23, 4  }
 0x5d6   :  { %23 = sbr.rel (!%p21_p5) target bundleno = 2 (0x2), region = 117 }

</bundles_post_ra>
